<compile_context>
chip_gen: v7x
topology: tpu7x:2x2x1
jax: 0.10.0
libtpu: 0.0.40
codegen_flags: <defaults>
</compile_context>

<pallas_src>
import jax
import jax.numpy as jnp
from jax.experimental import pallas as pl
from jax.experimental.pallas import tpu as pltpu


def _round_up(x, m):
    return (x + m - 1) // m * m


def _cdiv(a, b):
    return (a + b - 1) // b


def _disc_kernel(s_ref, z_ref, w1s_ref, w1z_ref, b1_ref, w2_ref, b2_ref, o_ref):
    # s/z: (TB, F) f32 activation tiles; w1s/w1z: (F, H) bf16 resident;
    # b1/w2: (1, H) f32 resident; b2: (1,) f32 in SMEM; o: (1, 1, TB) f32.
    s_b = s_ref[...].astype(jnp.bfloat16)
    z_b = z_ref[...].astype(jnp.bfloat16)

    # Layer 1: fused "concat" as two accumulated MXU dots (bf16 in, f32 acc).
    # TODO(synk): on v7x verify the second dot accumulates into the MRB; if not,
    # fuse as a single K-accumulation over an in-VMEM (TB, 2F) tile.
    h = jnp.dot(s_b, w1s_ref[...], preferred_element_type=jnp.float32)
    h = h + jnp.dot(z_b, w1z_ref[...], preferred_element_type=jnp.float32)
    h = h + b1_ref[...]

    # LeakyReLU(0.2): one vmul + vmax on the VPU.
    h = jnp.maximum(h, 0.2 * h)

    # Layer 2 (output width 1): (1, H) . (TB, H)^T -> (1, TB), i.e. the result
    # comes out lane-dense (batch in lanes), avoiding any 1-lane-wide store.
    y = jax.lax.dot_general(
        w2_ref[...], h,
        dimension_numbers=(((1,), (1,)), ((), ())),
        preferred_element_type=jnp.float32)
    y = y + b2_ref[0]

    # Numerically stable sigmoid via tanh (EUP slot).
    o_ref[...] = (0.5 * (jnp.tanh(0.5 * y) + 1.0)).reshape(o_ref.shape).astype(o_ref.dtype)


def prepare_params(params):
    """One-time weight prep (split, bf16 cast, reshape) hoisted out of forward."""
    w1, b1, w2, b2 = params["w1"], params["b1"], params["w2"], params["b2"]
    D, H = w1.shape
    assert D % 2 == 0
    F = D // 2
    return {
        "w1s": w1[:F].astype(jnp.bfloat16),            # (F, H)
        "w1z": w1[F:].astype(jnp.bfloat16),            # (F, H)
        "b1": b1.reshape(1, H).astype(jnp.float32),    # (1, H)
        "w2": w2.reshape(1, H).astype(jnp.float32),    # (1, H) row
        "b2": b2.reshape(1).astype(jnp.float32),       # (1,) SMEM scalar
    }


def _choose_tile(B, F, H, batch_tile, vmem_budget):
    # TB: multiple of 128 (lane-dense output row, MXU-friendly M).
    TB = max(128, _round_up(min(batch_tile, _round_up(B, 128)), 128))
    TB = min(TB, _round_up(B, 128))
    # Prefer >= 2 grid steps when the batch allows (v7x megacore sharding).
    if _cdiv(B, TB) == 1 and B > 128:
        TB = _round_up(_cdiv(B, 2), 128)

    def ws(tb):
        return (2 * F * H * 2 + 2 * H * 4       # resident bf16 weights + b1/w2 rows
                + 2 * 2 * tb * F * 4            # double-buffered f32 s/z tiles
                + 2 * tb * 4                    # double-buffered output rows
                + tb * H * 4                    # f32 h intermediate
                + 2 * tb * F * 2)               # in-kernel bf16 casts of s/z

    while TB > 128 and ws(TB) > vmem_budget:
        TB -= 128
    return TB, ws(TB)


def discriminator_forward(s, z, prepared, *, batch_tile=512,
                          vmem_budget_bytes=40 * 1024 * 1024):
    """s, z: (B, in_features) float32. Returns (B, 1) float32 sigmoid output."""
    w1s, w1z = prepared["w1s"], prepared["w1z"]
    b1r, w2r, b2s = prepared["b1"], prepared["w2"], prepared["b2"]
    B, F = s.shape
    assert z.shape == (B, F)
    assert w1s.shape[0] == F and w1z.shape[0] == F
    H = w1s.shape[1]

    TB, ws = _choose_tile(B, F, H, batch_tile, vmem_budget_bytes)
    n_tiles = _cdiv(B, TB)

    # VMEM limit: working-set estimate with 2x slack, capped at 64 MiB (v7x-safe).
    vmem_limit = int(min(64 * 1024 * 1024, max(2 * ws, 16 * 1024 * 1024)))

    cost = pl.CostEstimate(
        flops=2 * B * (2 * F) * H + 2 * B * H,
        transcendentals=B,
        bytes_accessed=(2 * B * F * 4            # s, z (f32, read once)
                        + 2 * F * H * 2          # w1 halves (bf16)
                        + 2 * H * 4 + 4          # b1, w2 row, b2
                        + n_tiles * TB * 4),     # output slab
    )

    grid_spec = pltpu.PrefetchScalarGridSpec(
        num_scalar_prefetch=0,
        grid=(n_tiles,),
        in_specs=[
            pl.BlockSpec((TB, F), lambda i: (i, 0)),            # s tile (f32)
            pl.BlockSpec((TB, F), lambda i: (i, 0)),            # z tile (f32)
            pl.BlockSpec((F, H), lambda i: (0, 0)),             # w1[:F]  (resident)
            pl.BlockSpec((F, H), lambda i: (0, 0)),             # w1[F:]  (resident)
            pl.BlockSpec((1, H), lambda i: (0, 0)),             # b1      (resident)
            pl.BlockSpec((1, H), lambda i: (0, 0)),             # w2 row  (resident)
            pl.BlockSpec(memory_space=pltpu.MemorySpace.SMEM),  # b2 scalar
        ],
        out_specs=pl.BlockSpec((1, 1, TB), lambda i: (i, 0, 0)),
    )

    out = pl.pallas_call(
        _disc_kernel,
        out_shape=jax.ShapeDtypeStruct((n_tiles, 1, TB), jnp.float32),
        grid_spec=grid_spec,
        compiler_params=pltpu.CompilerParams(
            dimension_semantics=("parallel",),
            vmem_limit_bytes=vmem_limit,
        ),
        cost_estimate=cost,
    )(s, z, w1s, w1z, b1r, w2r, b2s)

    # Lane-dense (n_tiles, 1, TB) slab -> (B, 1); tail lanes past B are garbage
    # from the partial trailing block and are sliced off here.
    return out.reshape(-1)[:B].reshape(B, 1)


def init_params(key, in_features, hid_dim):
    """Synthetic init mirroring nn.Linear shapes.

    torch: Linear(2F, H).weight is (H, 2F); we store the transpose (2F, H)
    so the kernel can do x @ w1 directly.
    """
    k1, k2, k3, k4 = jax.random.split(key, 4)
    d_in = 2 * in_features
    bound1 = 1.0 / jnp.sqrt(d_in)
    bound2 = 1.0 / jnp.sqrt(hid_dim)
    w1 = jax.random.uniform(k1, (d_in, hid_dim), jnp.float32, -bound1, bound1)
    b1 = jax.random.uniform(k2, (1, hid_dim), jnp.float32, -bound1, bound1)
    w2 = jax.random.uniform(k3, (hid_dim, 1), jnp.float32, -bound2, bound2)
    b2 = jax.random.uniform(k4, (1, 1), jnp.float32, -bound2, bound2)
    return {"w1": w1, "b1": b1, "w2": w2, "b2": b2}


def _reference(s, z, params):
    # Matches the kernel's precision choice: bf16 layer-1 matmul, f32 elsewhere.
    x = jnp.concatenate([s, z], axis=-1).astype(jnp.bfloat16)
    h = jnp.dot(x, params["w1"].astype(jnp.bfloat16),
                preferred_element_type=jnp.float32) + params["b1"]
    h = jnp.where(h >= 0.0, h, 0.2 * h)
    y = h @ params["w2"] + params["b2"]
    return jax.nn.sigmoid(y)


if __name__ == "__main__":
    # Small shapes consistent with the module (defaults 1600/1024 scaled down).
    batch = 8
    in_features = 64     # -> concat dim 128 (lane-aligned)
    hid_dim = 128

    key = jax.random.PRNGKey(0)
    kp, ks, kz = jax.random.split(key, 3)
    params = init_params(kp, in_features, hid_dim)
    prepared = prepare_params(params)
    s = jax.random.normal(ks, (batch, in_features), jnp.float32)
    z = jax.random.normal(kz, (batch, in_features), jnp.float32)

    out = jax.block_until_ready(discriminator_forward(s, z, prepared))
    ref = _reference(s, z, params)
    assert out.shape == (batch, 1)
    assert jnp.allclose(out, ref, atol=1e-3, rtol=1e-3), \
        float(jnp.max(jnp.abs(out - ref)))

    # Second check: multi-step grid with a partial trailing batch tile
    # (B=300, TB=128 -> 3 grid steps, last block reads only 44 valid rows).
    ks2, kz2 = jax.random.split(jax.random.PRNGKey(1), 2)
    s2 = jax.random.normal(ks2, (300, in_features), jnp.float32)
    z2 = jax.random.normal(kz2, (300, in_features), jnp.float32)
    out2 = jax.block_until_ready(
        discriminator_forward(s2, z2, prepared, batch_tile=128))
    ref2 = _reference(s2, z2, params)
    assert out2.shape == (300, 1)
    assert jnp.allclose(out2, ref2, atol=1e-3, rtol=1e-3), \
        float(jnp.max(jnp.abs(out2 - ref2)))

    print("KERNEL_OK")
</pallas_src>

<mosaic_0001>
module attributes {stable_mosaic.version = 11 : i64} {
  func.func @_disc_kernel(%arg0: i32, %arg1: memref<128x64xf32, #tpu.memory_space<vmem>>, %arg2: memref<128x64xf32, #tpu.memory_space<vmem>>, %arg3: memref<64x128xbf16, #tpu.memory_space<vmem>>, %arg4: memref<64x128xbf16, #tpu.memory_space<vmem>>, %arg5: memref<1x128xf32, #tpu.memory_space<vmem>>, %arg6: memref<1x128xf32, #tpu.memory_space<vmem>>, %arg7: memref<1xf32, #tpu.memory_space<smem>>, %arg8: memref<1x1x128xf32, #tpu.memory_space<vmem>>) attributes {dimension_semantics = [#tpu.dimension_semantics<parallel>], iteration_bounds = array<i64: 1>, scalar_prefetch = 0 : i64, scratch_operands = 0 : i64, tpu.core_type = #tpu.core_type<tc>, window_params = [{transform_indices = @transform_0, window_bounds = array<i64: 128, 64>}, {transform_indices = @transform_1, window_bounds = array<i64: 128, 64>}, {pipeline_mode = #tpu.pipeline_mode<synchronous>, transform_indices = @transform_2, window_bounds = array<i64: 64, 128>}, {pipeline_mode = #tpu.pipeline_mode<synchronous>, transform_indices = @transform_3, window_bounds = array<i64: 64, 128>}, {pipeline_mode = #tpu.pipeline_mode<synchronous>, transform_indices = @transform_4, window_bounds = array<i64: 1, 128>}, {pipeline_mode = #tpu.pipeline_mode<synchronous>, transform_indices = @transform_5, window_bounds = array<i64: 1, 128>}, {transform_indices = @transform_6, window_bounds = array<i64: 1>}, {transform_indices = @transform_7, window_bounds = array<i64: 1, 1, 128>}]} {
    %c0 = arith.constant 0 : index
    %c0_0 = arith.constant 0 : index
    %0 = vector.load %arg1[%c0, %c0_0] : memref<128x64xf32, #tpu.memory_space<vmem>>, vector<128x64xf32>
    %1 = arith.truncf %0 : vector<128x64xf32> to vector<128x64xbf16>
    %c0_1 = arith.constant 0 : index
    %c0_2 = arith.constant 0 : index
    %2 = vector.load %arg2[%c0_1, %c0_2] : memref<128x64xf32, #tpu.memory_space<vmem>>, vector<128x64xf32>
    %3 = arith.truncf %2 : vector<128x64xf32> to vector<128x64xbf16>
    %c0_3 = arith.constant 0 : index
    %c0_4 = arith.constant 0 : index
    %4 = vector.load %arg3[%c0_3, %c0_4] : memref<64x128xbf16, #tpu.memory_space<vmem>>, vector<64x128xbf16>
    %cst = arith.constant dense<0.000000e+00> : vector<128x128xf32>
    %5 = tpu.matmul %1, %4, %cst {dimension_numbers = #tpu.dot_dimension_numbers<[1], [0], [0], [1], [0, 0, 1, 1], [], []>} : vector<128x64xbf16>, vector<64x128xbf16>, vector<128x128xf32> -> vector<128x128xf32>
    %c0_5 = arith.constant 0 : index
    %c0_6 = arith.constant 0 : index
    %6 = vector.load %arg4[%c0_5, %c0_6] : memref<64x128xbf16, #tpu.memory_space<vmem>>, vector<64x128xbf16>
    %cst_7 = arith.constant dense<0.000000e+00> : vector<128x128xf32>
    %7 = tpu.matmul %3, %6, %cst_7 {dimension_numbers = #tpu.dot_dimension_numbers<[1], [0], [0], [1], [0, 0, 1, 1], [], []>} : vector<128x64xbf16>, vector<64x128xbf16>, vector<128x128xf32> -> vector<128x128xf32>
    %8 = arith.addf %5, %7 : vector<128x128xf32>
    %c0_8 = arith.constant 0 : index
    %c0_9 = arith.constant 0 : index
    %9 = vector.load %arg5[%c0_8, %c0_9] : memref<1x128xf32, #tpu.memory_space<vmem>>, vector<1x128xf32>
    %10 = vector.broadcast %9 : vector<1x128xf32> to vector<128x128xf32>
    %11 = arith.addf %8, %10 : vector<128x128xf32>
    %cst_10 = arith.constant 2.000000e-01 : f32
    %12 = vector.broadcast %cst_10 : f32 to vector<128x128xf32>
    %13 = arith.mulf %12, %11 : vector<128x128xf32>
    %14 = arith.maximumf %11, %13 : vector<128x128xf32>
    %c0_11 = arith.constant 0 : index
    %c0_12 = arith.constant 0 : index
    %15 = vector.load %arg6[%c0_11, %c0_12] : memref<1x128xf32, #tpu.memory_space<vmem>>, vector<1x128xf32>
    %cst_13 = arith.constant dense<0.000000e+00> : vector<1x128xf32>
    %16 = tpu.matmul %15, %14, %cst_13 {dimension_numbers = #tpu.dot_dimension_numbers<[1], [1], [0], [0], [0, 0, 1, 0], [], []>} : vector<1x128xf32>, vector<128x128xf32>, vector<1x128xf32> -> vector<1x128xf32>
    %c0_14 = arith.constant 0 : index
    %17 = memref.load %arg7[%c0_14] : memref<1xf32, #tpu.memory_space<smem>>
    %18 = vector.broadcast %17 : f32 to vector<1x128xf32>
    %19 = arith.addf %16, %18 : vector<1x128xf32>
    %cst_15 = arith.constant 5.000000e-01 : f32
    %20 = vector.broadcast %cst_15 : f32 to vector<1x128xf32>
    %21 = arith.mulf %20, %19 : vector<1x128xf32>
    %22 = math.tanh %21 : vector<1x128xf32>
    %cst_16 = arith.constant 1.000000e+00 : f32
    %23 = vector.broadcast %cst_16 : f32 to vector<1x128xf32>
    %24 = arith.addf %22, %23 : vector<1x128xf32>
    %cst_17 = arith.constant 5.000000e-01 : f32
    %25 = vector.broadcast %cst_17 : f32 to vector<1x128xf32>
    %26 = arith.mulf %25, %24 : vector<1x128xf32>
    %27 = vector.shape_cast %26 : vector<1x128xf32> to vector<1x1x128xf32>
    %c0_18 = arith.constant 0 : index
    %c0_19 = arith.constant 0 : index
    %c0_20 = arith.constant 0 : index
    %28 = vector.load %arg8[%c0_18, %c0_19, %c0_20] : memref<1x1x128xf32, #tpu.memory_space<vmem>>, vector<1x1x128xf32>
    tpu.vector_store %arg8[%c0_18, %c0_19, %c0_20], %27 {strides = array<i32>} : memref<1x1x128xf32, #tpu.memory_space<vmem>>, vector<1x1x128xf32>,
    return
  }
  func.func @transform_0(%arg0: i32) -> (i32, i32) {
    %c0_i32 = arith.constant 0 : i32
    %c0_i32_0 = arith.constant 0 : i32
    return %arg0, %c0_i32 : i32, i32
  }
  func.func @transform_1(%arg0: i32) -> (i32, i32) {
    %c0_i32 = arith.constant 0 : i32
    %c0_i32_0 = arith.constant 0 : i32
    return %arg0, %c0_i32 : i32, i32
  }
  func.func @transform_2(%arg0: i32) -> (i32, i32) {
    %c0_i32 = arith.constant 0 : i32
    %c0_i32_0 = arith.constant 0 : i32
    %c0_i32_1 = arith.constant 0 : i32
    return %c0_i32, %c0_i32_0 : i32, i32
  }
  func.func @transform_3(%arg0: i32) -> (i32, i32) {
    %c0_i32 = arith.constant 0 : i32
    %c0_i32_0 = arith.constant 0 : i32
    %c0_i32_1 = arith.constant 0 : i32
    return %c0_i32, %c0_i32_0 : i32, i32
  }
  func.func @transform_4(%arg0: i32) -> (i32, i32) {
    %c0_i32 = arith.constant 0 : i32
    %c0_i32_0 = arith.constant 0 : i32
    %c0_i32_1 = arith.constant 0 : i32
    return %c0_i32, %c0_i32_0 : i32, i32
  }
  func.func @transform_5(%arg0: i32) -> (i32, i32) {
    %c0_i32 = arith.constant 0 : i32
    %c0_i32_0 = arith.constant 0 : i32
    %c0_i32_1 = arith.constant 0 : i32
    return %c0_i32, %c0_i32_0 : i32, i32
  }
  func.func @transform_6(%arg0: i32) -> i32 {
    %c0_i32 = arith.constant 0 : i32
    %c0_i32_0 = arith.constant 0 : i32
    return %c0_i32 : i32
  }
  func.func @transform_7(%arg0: i32) -> (i32, i32, i32) {
    %c0_i32 = arith.constant 0 : i32
    %c0_i32_0 = arith.constant 0 : i32
    %c0_i32_1 = arith.constant 0 : i32
    return %arg0, %c0_i32, %c0_i32_0 : i32, i32, i32
  }
}

</mosaic_0001>

<bundles_post_ra>
// kernel: tpu_custom_call.1
= control target key start
LH: loop header
LB: loop body
LE: loop exit
PB: predicated region body
PF: predicated region fallthrough
CT: control target
= control target key end

     0   :  { %13 = vsyncpa [#allocation4], 0  ;;  %s1088_s0 = inlined_call_operand.hbm [shape: f32[8,64], index: 0, kind: input, shape index: {}]   ;;  %s1089_s1 = inlined_call_operand.hbm [shape: f32[8,64], index: 1, kind: input, shape index: {}]   ;;  %s1090_s2 = inlined_call_operand.hbm [shape: bf16[64,128], index: 2, kind: input, shape index: {}]   ;;  %s1091_s3 = inlined_call_operand.hbm [shape: bf16[64,128], index: 3, kind: input, shape index: {}]   ;;  %s1092_s4 = inlined_call_operand.vmem [shape: f32[1,128], index: 4, kind: input, shape index: {}]   ;;  %s1093_s5 = inlined_call_operand.vmem [shape: f32[1,128], index: 5, kind: input, shape index: {}]   ;;  %s1094_s6 = inlined_call_operand.<no memory space> [shape: f32[1], index: 6, kind: input, shape index: {}]   ;;  %s1095_s7 = inlined_call_operand.hbm [shape: f32[1,1,128], index: 7, kind: output, shape index: {}]  }
   0x1   :  { %14 = vsyncpa [#allocation7], 0 }
   0x2   :  { %15 = vsyncpa [#allocation10], 0 }
   0x3   :  { %16 = vsyncpa [#allocation5], 0 }
   0x4   :  { %21 = vsyncadd [#allocation4], 1920  ;;  %s918_s24 = smov [#allocation3]   ;;  %s800_s28 = scalar_lea.hbm %s1088_s0, 128 }
   0x5   :  { %s22_s25 = sshll.u32 %s918_s24, 4  ;;  %p801_p0 = scmp.ne.s32.totalorder %s1088_s0, %s800_s28  ;;  %s23_s25 = int_to_ptr.vmem [resolvable:$true] %s22_s25 }
   0x6   :  { %p804_p1 = scmp.lt.u32.totalorder %s800_s28, %s1088_s0 }
   0x8   :  { %p806_p2 = pnand %p804_p1, %p801_p0 }
   0xa   :  { %809 = shalt.err (!%p806_p2)
}
   0xb   :  { %s810_s10 = scalar_lea.vmem %s23_s25, 128  ;;  %s814_s11 = scalar_lea.vmem %s23_s25, 2048 }
   0xc   :  { %p811_p3 = scmp.ne.s32.totalorder %s23_s25, %s810_s10  ;;  %p815_p4 = scmp.lt.s32.totalorder %s23_s25, %s23_s25 }
   0xd   :  { %p816_p5 = scmp.lt.s32.totalorder %s814_s11, %s810_s10 }
   0xf   :  { %p817_p6 = por %p816_p5, %p815_p4 }
  0x11   :  { %p818_p7 = pnand %p817_p6, %p811_p3 }
  0x13   :  { %821 = shalt.err (!%p818_p7)
}
  0x14   :  { %s919_s12 = smov 128   ;;  %s920_s13 = smov 8  }
  0x15   :  { %28 = dma.hbm_to_vmem [thread:$0]  %s1088_s0, 128, %s23_s25, [#allocation4], %s919_s12, %s919_s12, %s920_s13  }
  0x16   :  { %33 = vsyncadd [#allocation7], 1920  ;;  %s921_s16 = smov [#allocation6]   ;;  %s922_s18 = smov [#allocation8]  }
  0x17   :  { %s34_s17 = sshll.u32 %s921_s16, 4  ;;  %s46_s19 = sshll.u32 %s922_s18, 4  ;;  %s35_s17 = int_to_ptr.vmem [resolvable:$true] %s34_s17  ;;  %s982_s19 = int_to_ptr.vmem [resolvable:$true] %s46_s19 }
  0x18   :  { %s822_s22 = scalar_lea.hbm %s1089_s1, 128 }
  0x19   :  { %p823_p8 = scmp.ne.s32.totalorder %s1089_s1, %s822_s22  ;;  %p826_p9 = scmp.lt.u32.totalorder %s822_s22, %s1089_s1 }
  0x1b   :  { %p828_p10 = pnand %p826_p9, %p823_p8 }
  0x1d   :  { %831 = shalt.err (!%p828_p10)
}
  0x1e   :  { %s832_s0 = scalar_lea.vmem %s35_s17, 128  ;;  %s836_s25 = scalar_lea.vmem %s35_s17, 2048 }
  0x1f   :  { %p833_p11 = scmp.ne.s32.totalorder %s35_s17, %s832_s0  ;;  %p837_p12 = scmp.lt.s32.totalorder %s35_s17, %s35_s17 }
  0x20   :  { %p838_p13 = scmp.lt.s32.totalorder %s836_s25, %s832_s0 }
  0x22   :  { %p839_p0 = por %p838_p13, %p837_p12 }
  0x24   :  { %p840_p1 = pnand %p839_p0, %p833_p11 }
  0x26   :  { %843 = shalt.err (!%p840_p1)
}
  0x27   :  { %40 = dma.hbm_to_vmem [thread:$0]  %s1089_s1, 128, %s35_s17, [#allocation7], %s919_s12, %s919_s12, %s920_s13  }
  0x28   :  { %s844_s9 = scalar_lea.hbm %s1090_s2, 512 }
  0x29   :  { %p845_p2 = scmp.ne.s32.totalorder %s1090_s2, %s844_s9  ;;  %p848_p3 = scmp.lt.u32.totalorder %s844_s9, %s1090_s2 }
  0x2b   :  { %p850_p4 = pnand %p848_p3, %p845_p2 }
  0x2d   :  { %853 = shalt.err (!%p850_p4)
}
  0x2e   :  { %s854_s16 = scalar_lea.vmem %s982_s19, 512  ;;  %p859_p6 = scmp.lt.s32.totalorder %s982_s19, %s982_s19 }
  0x2f   :  { %p855_p5 = scmp.ne.s32.totalorder %s982_s19, %s854_s16  ;;  %p860_p7 = scmp.lt.s32.totalorder %s854_s16, %s854_s16 }
  0x31   :  { %p861_p8 = por %p860_p7, %p859_p6 }
  0x33   :  { %p862_p9 = pnand %p861_p8, %p855_p5 }
  0x35   :  { %865 = shalt.err (!%p862_p9)
}
  0x36   :  { %s923_s1 = smov 64   ;;  %s924_s12 = smov 4  }
  0x37   :  { %52 = dma.hbm_to_vmem [thread:$0]  %s1090_s2, 512, %s982_s19, [#allocation7], %s923_s1, %s923_s1, %s924_s12  }
  0x38   :  { %s925_s18 = smov [#allocation9]   ;;  %s866_s23 = scalar_lea.hbm %s1091_s3, 512 }
  0x39   :  { %s58_s20 = sshll.u32 %s925_s18, 4  ;;  %p867_p10 = scmp.ne.s32.totalorder %s1091_s3, %s866_s23  ;;  %s59_s20 = int_to_ptr.vmem [resolvable:$true] %s58_s20 }
  0x3a   :  { %p870_p11 = scmp.lt.u32.totalorder %s866_s23, %s1091_s3 }
  0x3c   :  { %p872_p12 = pnand %p870_p11, %p867_p10 }
  0x3e   :  { %875 = shalt.err (!%p872_p12)
}
  0x3f   :  { %s876_s25 = scalar_lea.vmem %s59_s20, 512  ;;  %p881_p0 = scmp.lt.s32.totalorder %s59_s20, %s59_s20 }
  0x40   :  { %p877_p13 = scmp.ne.s32.totalorder %s59_s20, %s876_s25  ;;  %p882_p1 = scmp.lt.s32.totalorder %s876_s25, %s876_s25 }
  0x42   :  { %p883_p2 = por %p882_p1, %p881_p0 }
  0x44   :  { %p884_p3 = pnand %p883_p2, %p877_p13 }
  0x46   :  { %887 = shalt.err (!%p884_p3)
}
  0x47   :  { %64 = dma.hbm_to_vmem [thread:$0]  %s1091_s3, 512, %s59_s20, [#allocation10], %s923_s1, %s923_s1, %s924_s12  }
  0x48   :  { %910 = dma.done.wait [#allocation4], 2048  }
  0x49   :  { %911 = vsyncadd [#allocation4], 4294965248 }
  0x4a   :  { %912 = dma.done.wait [#allocation7], 2560  }
  0x4b   :  { %913 = vsyncadd [#allocation7], 4294964736 }
  0x4c   :  { %914 = dma.done.wait [#allocation10], 512  }
  0x4d   :  { %915 = vsyncadd [#allocation10], 4294966784  ;;  %v790_v0 = vld [vmem:[#allocation9] sm:$0xff]   ;;  %v791_v1 = vld [vmem:[#allocation9 + $0x8] sm:$0xff]   ;;  %vm172_vm0 = vcmask 523264   ;;  %v926_v56 = vmov 0.0|0.0  }
  0x4e   :  { %655 = vmatprep.subr.bf16.mxu0 %v790_v0  ;;  %v792_v2 = vld [vmem:[#allocation9 + $0x10] sm:$0xff]   ;;  %v108_v3 = vld [vmem:[#allocation6] sm:$0xff]  ;;  %v109_v4 = vld [vmem:[#allocation6 + $0x8] sm:$0xff]  ;;  %738 = vmatprep.subr.bf16.mxu1 %v926_v56  ;;  %vm927_vm1 = vmmov 0   ;;  %v928_v57 = vmov 0.0   ;;  %s929_s9 = smov [#allocation11]  }
  0x4f   :  { %656 = vmatpush3.bf16.msra.mxu0 %v790_v0  ;;  %v124_v5 = vpack.c.bf16 %v109_v4, %v108_v3  ;;  %v793_v6 = vld [vmem:[#allocation9 + $0x18] sm:$0xff]   ;;  %v110_v7 = vld [vmem:[#allocation6 + $0x10] sm:$0xff]  ;;  %v794_v9 = vld [vmem:[#allocation8] sm:$0xff]   ;;  %735 = vmatprep.mubr.msk.f32.mxu1 %vm927_vm1, %v928_v57  ;;  %s578_s10 = sshll.u32 %s929_s9, 4  ;;  %s579_s10 = int_to_ptr.vmem [resolvable:$true] %s578_s10 }
  0x50   :  { %657 = vmatprep.subr.bf16.mxu0 %v791_v1  ;;  %v111_v8 = vld [vmem:[#allocation6 + $0x18] sm:$0xff]  ;;  %v112_v10 = vld [vmem:[#allocation6 + $0x20] sm:$0xff]  ;;  %v113_v11 = vld [vmem:[#allocation6 + $0x28] sm:$0xff]  ;;  %s888_s11 = scalar_lea.vmem %s579_s10, 16  ;;  %p893_p5 = scmp.lt.s32.totalorder %s579_s10, %s579_s10 }
  0x51   :  { %663 = vmatprep.mubr.msk.bf16.mxu0 %vm172_vm0, %v124_v5  ;;  %v125_v12 = vpack.c.bf16 %v111_v8, %v110_v7  ;;  %v126_v13 = vpack.c.bf16 %v113_v11, %v112_v10  ;;  %v795_v14 = vld [vmem:[#allocation8 + $0x8] sm:$0xff]   ;;  %v114_v15 = vld [vmem:[#allocation6 + $0x30] sm:$0xff]  ;;  %v115_v16 = vld [vmem:[#allocation6 + $0x38] sm:$0xff]  ;;  %p889_p4 = scmp.ne.s32.totalorder %s579_s10, %s888_s11 }
  0x52   :  { %v116_v17 = vld [vmem:[#allocation6 + $0x40] sm:$0xff]  ;;  %v117_v18 = vld [vmem:[#allocation6 + $0x48] sm:$0xff]  ;;  %v796_v19 = vld [vmem:[#allocation8 + $0x10] sm:$0xff]   ;;  %v127_v20 = vpack.c.bf16 %v115_v16, %v114_v15 }
  0x53   :  { %658 = vmatpush3.bf16.msra.mxu0 %v791_v1  ;;  %v128_v21 = vpack.c.bf16 %v117_v18, %v116_v17  ;;  %v797_v22 = vld [vmem:[#allocation8 + $0x18] sm:$0xff]   ;;  %v118_v23 = vld [vmem:[#allocation6 + $0x50] sm:$0xff]  ;;  %v120_v25 = vld [vmem:[#allocation6 + $0x60] sm:$0xff] }
  0x54   :  { %659 = vmatprep.subr.bf16.mxu0 %v792_v2  ;;  %v119_v24 = vld [vmem:[#allocation6 + $0x58] sm:$0xff]  ;;  %v121_v26 = vld [vmem:[#allocation6 + $0x68] sm:$0xff]  ;;  %v122_v29 = vld [vmem:[#allocation6 + $0x70] sm:$0xff] }
  0x55   :  { %v129_v27 = vpack.c.bf16 %v119_v24, %v118_v23  ;;  %v130_v28 = vpack.c.bf16 %v121_v26, %v120_v25  ;;  %v123_v30 = vld [vmem:[#allocation6 + $0x78] sm:$0xff]  ;;  %v84_v31 = vld [vmem:[#allocation3] sm:$0xff]  ;;  %v85_v32 = vld [vmem:[#allocation3 + $0x8] sm:$0xff] }
  0x56   :  { %v131_v33 = vpack.c.bf16 %v123_v30, %v122_v29  ;;  %v100_v34 = vpack.c.bf16 %v85_v32, %v84_v31  ;;  %v86_v35 = vld [vmem:[#allocation3 + $0x10] sm:$0xff]  ;;  %v87_v36 = vld [vmem:[#allocation3 + $0x18] sm:$0xff]  ;;  %v88_v37 = vld [vmem:[#allocation3 + $0x20] sm:$0xff] }
  0x57   :  { %660 = vmatpush3.bf16.msra.mxu0 %v792_v2  ;;  %v89_v38 = vld [vmem:[#allocation3 + $0x28] sm:$0xff]  ;;  %v101_v39 = vpack.c.bf16 %v87_v36, %v86_v35  ;;  %v90_v41 = vld [vmem:[#allocation3 + $0x30] sm:$0xff]  ;;  %v91_v42 = vld [vmem:[#allocation3 + $0x38] sm:$0xff] }
  0x58   :  { %661 = vmatprep.subr.bf16.mxu0 %v793_v6  ;;  %v102_v40 = vpack.c.bf16 %v89_v38, %v88_v37  ;;  %v92_v43 = vld [vmem:[#allocation3 + $0x40] sm:$0xff]  ;;  %v93_v44 = vld [vmem:[#allocation3 + $0x48] sm:$0xff]  ;;  %v103_v45 = vpack.c.bf16 %v91_v42, %v90_v41  ;;  %v94_v47 = vld [vmem:[#allocation3 + $0x50] sm:$0xff] }
  0x59   :  { %v104_v46 = vpack.c.bf16 %v93_v44, %v92_v43  ;;  %v95_v48 = vld [vmem:[#allocation3 + $0x58] sm:$0xff]  ;;  %v96_v49 = vld [vmem:[#allocation3 + $0x60] sm:$0xff]  ;;  %v97_v50 = vld [vmem:[#allocation3 + $0x68] sm:$0xff] }
  0x5a   :  { %v105_v51 = vpack.c.bf16 %v95_v48, %v94_v47  ;;  %v106_v52 = vpack.c.bf16 %v97_v50, %v96_v49  ;;  %v98_v53 = vld [vmem:[#allocation3 + $0x70] sm:$0xff]  ;;  %v99_v54 = vld [vmem:[#allocation3 + $0x78] sm:$0xff]  ;;  %v1045_v58 = vld [vmem:[%s1092_s4] ss:$0 sm:$0xff] }
  0x5b   :  { %662 = vmatpush3.bf16.msra.mxu0 %v793_v6  ;;  %v107_v55 = vpack.c.bf16 %v99_v54, %v98_v53 }
  0x5c   :  { %679 = vmatprep.subr.bf16.mxu0 %v794_v9 }
  0x5e   :  { %664 = vmatmul.mubr.msk.bf16.vlgmr.msra.gmra.mrb[0].mxu0 %vm172_vm0, %v125_v12 }
  0x5f   :  { %680 = vmatpush3.bf16.msra.mxu0 %v794_v9  ;;  %667 = vmatprep.mubr.msk.bf16.mxu0 %vm172_vm0, %v126_v13 }
  0x60   :  { %681 = vmatprep.subr.bf16.mxu0 %v795_v14 }
  0x63   :  { %682 = vmatpush3.bf16.msra.mxu0 %v795_v14 }
  0x64   :  { %683 = vmatprep.subr.bf16.mxu0 %v796_v19 }
  0x66   :  { %668 = vmatmul.mubr.msk.bf16.gmra.mrb[4].mxu0 %vm172_vm0, %v127_v20 }
  0x67   :  { %671 = vmatprep.mubr.msk.bf16.mxu0 %vm172_vm0, %v128_v21  ;;  %684 = vmatpush3.bf16.msra.mxu0 %v796_v19 }
  0x68   :  { %685 = vmatprep.subr.bf16.mxu0 %v797_v22 }
  0x6b   :  { %686 = vmatpush3.bf16.msra.mxu0 %v797_v22 }
  0x6e   :  { %672 = vmatmul.mubr.msk.bf16.gmra.mrb[8].mxu0 %vm172_vm0, %v129_v27 }
  0x6f   :  { %675 = vmatprep.mubr.msk.bf16.mxu0 %vm172_vm0, %v130_v28 }
  0x76   :  { %676 = vmatmul.mubr.msk.bf16.gmra.mrb[12].mxu0 %vm172_vm0, %v131_v33 }
  0x77   :  { %687 = vmatprep.mubr.msk.bf16.mxu0 %vm172_vm0, %v100_v34 }
  0x7e   :  { %688 = vmatmul.mubr.msk.bf16.vlgmr.msra.gmra.mrb[0].mxu0 %vm172_vm0, %v101_v39 }
  0x7f   :  { %691 = vmatprep.mubr.msk.bf16.mxu0 %vm172_vm0, %v102_v40 }
  0x86   :  { %692 = vmatmul.mubr.msk.bf16.gmra.mrb[4].mxu0 %vm172_vm0, %v103_v45 }
  0x87   :  { %695 = vmatprep.mubr.msk.bf16.mxu0 %vm172_vm0, %v104_v46 }
  0x8e   :  { %696 = vmatmul.mubr.msk.bf16.gmra.mrb[8].mxu0 %vm172_vm0, %v105_v51 }
  0x8f   :  { %699 = vmatprep.mubr.msk.bf16.mxu0 %vm172_vm0, %v106_v52 }
  0x96   :  { %700 = vmatmul.mubr.msk.bf16.gmra.mrb[12].mxu0 %vm172_vm0, %v107_v55 }
 0x151   :  { %v689_v59 = vpop.f32.mrb[0].mxu0 }
 0x152   :  { %v448_v60 = vadd.f32 %v689_v59, %v1045_v58  ;;  %v376_v61 = vpop.f32.mrb[1].mxu0 }
 0x153   :  { %v446_v62 = vadd.f32 %v1045_v58, %v376_v61  ;;  %v690_v63 = vpop.f32.mrb[2].mxu0 }
 0x154   :  { %v464_v0 = vmul.f32 0.2, %v448_v60  ;;  %v449_v1 = vadd.f32 %v690_v63, %v1045_v58  ;;  %v379_v2 = vpop.f32.mrb[3].mxu0 }
 0x155   :  { %v462_v3 = vmul.f32 0.2, %v446_v62  ;;  %v447_v4 = vadd.f32 %v1045_v58, %v379_v2 }
 0x156   :  { %v465_v5 = vmul.f32 0.2, %v449_v1  ;;  %v480_v7 = vmax.f32 %v448_v60, %v464_v0 }
 0x157   :  { %v463_v6 = vmul.f32 0.2, %v447_v4  ;;  %v478_v9 = vmax.f32 %v446_v62, %v462_v3 }
 0x158   :  { %v481_v8 = vmax.f32 %v449_v1, %v465_v5  ;;  %v496_v5 = vstv %s1094_s6 }
 0x159   :  { %v479_v10 = vmax.f32 %v447_v4, %v463_v6  ;;  %v693_v11 = vpop.f32.mrb[4].mxu0 }
 0x15a   :  { %v452_v12 = vadd.f32 %v693_v11, %v1045_v58  ;;  %v392_v13 = vpop.f32.mrb[5].mxu0  ;;  %v742_v14 = vpack.c.bf16 %v481_v8, %v480_v7 }
 0x15b   :  { %v450_v15 = vadd.f32 %v1045_v58, %v392_v13  ;;  %v694_v16 = vpop.f32.mrb[6].mxu0  ;;  %v739_v17 = vpack.c.bf16 %v479_v10, %v478_v9 }
 0x15c   :  { %v468_v18 = vmul.f32 0.2, %v452_v12  ;;  %v453_v19 = vadd.f32 %v694_v16, %v1045_v58  ;;  %v395_v20 = vpop.f32.mrb[7].mxu0 }
 0x15d   :  { %v466_v21 = vmul.f32 0.2, %v450_v15  ;;  %v451_v22 = vadd.f32 %v1045_v58, %v395_v20  ;;  %740 = vmatpush3.bf16.xpose.msra.mxu1 %v739_v17 }
 0x15e   :  { %v469_v23 = vmul.f32 0.2, %v453_v19  ;;  %741 = vmatprep.subr.bf16.mxu1 %v926_v56  ;;  %v484_v25 = vmax.f32 %v452_v12, %v468_v18 }
 0x15f   :  { %v467_v24 = vmul.f32 0.2, %v451_v22  ;;  %v482_v27 = vmax.f32 %v450_v15, %v466_v21 }
 0x160   :  { %v485_v26 = vmax.f32 %v453_v19, %v469_v23 }
 0x161   :  { %v483_v28 = vmax.f32 %v451_v22, %v467_v24  ;;  %v697_v29 = vpop.f32.mrb[8].mxu0 }
 0x162   :  { %v456_v30 = vadd.f32 %v697_v29, %v1045_v58  ;;  %v408_v31 = vpop.f32.mrb[9].mxu0  ;;  %v748_v32 = vpack.c.bf16 %v485_v26, %v484_v25 }
 0x163   :  { %v454_v33 = vadd.f32 %v1045_v58, %v408_v31  ;;  %v698_v34 = vpop.f32.mrb[10].mxu0  ;;  %v745_v35 = vpack.c.bf16 %v483_v28, %v482_v27 }
 0x164   :  { %v472_v36 = vmul.f32 0.2, %v456_v30  ;;  %v457_v37 = vadd.f32 %v698_v34, %v1045_v58  ;;  %v411_v38 = vpop.f32.mrb[11].mxu0 }
 0x165   :  { %v470_v39 = vmul.f32 0.2, %v454_v33  ;;  %v455_v40 = vadd.f32 %v1045_v58, %v411_v38  ;;  %743 = vmatpush3.bf16.xpose.msra.mxu1 %v742_v14 }
 0x166   :  { %v473_v41 = vmul.f32 0.2, %v457_v37  ;;  %744 = vmatprep.subr.bf16.mxu1 %v926_v56  ;;  %v488_v43 = vmax.f32 %v456_v30, %v472_v36 }
 0x167   :  { %v471_v42 = vmul.f32 0.2, %v455_v40  ;;  %v486_v45 = vmax.f32 %v454_v33, %v470_v39 }
 0x168   :  { %v489_v44 = vmax.f32 %v457_v37, %v473_v41 }
 0x169   :  { %v487_v46 = vmax.f32 %v455_v40, %v471_v42  ;;  %v701_v47 = vpop.f32.mrb[12].mxu0 }
 0x16a   :  { %v460_v48 = vadd.f32 %v701_v47, %v1045_v58  ;;  %v424_v49 = vpop.f32.mrb[13].mxu0  ;;  %v754_v50 = vpack.c.bf16 %v489_v44, %v488_v43 }
 0x16b   :  { %v458_v51 = vadd.f32 %v1045_v58, %v424_v49  ;;  %v702_v52 = vpop.f32.mrb[14].mxu0  ;;  %v751_v53 = vpack.c.bf16 %v487_v46, %v486_v45 }
 0x16c   :  { %v476_v54 = vmul.f32 0.2, %v460_v48  ;;  %v461_v55 = vadd.f32 %v702_v52, %v1045_v58  ;;  %v427_v57 = vpop.f32.mrb[15].mxu0 }
 0x16d   :  { %v474_v59 = vmul.f32 0.2, %v458_v51  ;;  %v459_v60 = vadd.f32 %v1045_v58, %v427_v57  ;;  %746 = vmatpush3.bf16.xpose.msra.mxu1 %v745_v35  ;;  %v494_v58 = vld [vmem:[%s1093_s5] sm:$0x1]  ;;  %s892_s5 = scalar_lea.vmem %s579_s10, 32 }
 0x16e   :  { %v477_v61 = vmul.f32 0.2, %v461_v55  ;;  %747 = vmatprep.subr.bf16.mxu1 %v926_v56  ;;  %v492_v63 = vmax.f32 %v460_v48, %v476_v54  ;;  %p894_p6 = scmp.lt.s32.totalorder %s892_s5, %s888_s11 }
 0x16f   :  { %v475_v62 = vmul.f32 0.2, %v459_v60  ;;  %v490_v1 = vmax.f32 %v458_v51, %v474_v59 }
 0x170   :  { %v493_v0 = vmax.f32 %v461_v55, %v477_v61  ;;  %p895_p7 = por %p894_p6, %p893_p5 }
 0x171   :  { %v491_v2 = vmax.f32 %v459_v60, %v475_v62 }
 0x172   :  { %v760_v3 = vpack.c.bf16 %v493_v0, %v492_v63  ;;  %p896_p8 = pnand %p895_p7, %p889_p4 }
 0x173   :  { %v757_v4 = vpack.c.bf16 %v491_v2, %v490_v1 }
 0x175   :  { %749 = vmatpush3.bf16.xpose.msra.mxu1 %v748_v32 }
 0x176   :  { %750 = vmatprep.subr.bf16.mxu1 %v926_v56 }
 0x17d   :  { %752 = vmatpush3.bf16.xpose.msra.mxu1 %v751_v53 }
 0x17e   :  { %753 = vmatprep.subr.bf16.mxu1 %v926_v56 }
 0x185   :  { %755 = vmatpush3.bf16.xpose.msra.mxu1 %v754_v50 }
 0x186   :  { %756 = vmatprep.subr.bf16.mxu1 %v926_v56 }
 0x18d   :  { %758 = vmatpush3.bf16.xpose.msra.mxu1 %v757_v4 }
 0x18e   :  { %759 = vmatprep.subr.bf16.mxu1 %v926_v56 }
 0x195   :  { %761 = vmatpush3.bf16.xpose.msra.mxu1 %v760_v3 }
 0x19c   :  { %736 = vmatmul.mubr.f32.vlgmr.msra.gmra.mrb[0].mxu1 %v494_v58 }
 0x26f   :  { %v563_v6 = vpop.f32.mrb[0].mxu1 }
 0x270   :  { %v564_v7 = vadd.f32 %v563_v6, %v496_v5  ;;  %v737_v8 = vpop.f32.mrb[1].mxu1 }
 0x272   :  { %v567_v9 = vmul.f32 0.5, %v564_v7 }
 0x274   :  { %798 = vtanh.f32 %v567_v9 }
 0x27e   :  { %v799_v10 = vpop.eup %798 }
 0x27f   :  { %v569_v11 = vadd.f32 1.0, %v799_v10 }
 0x281   :  { %v570_v56 = vmul.f32 0.5, %v569_v11 }
 0x283   :  { %571 = vst [vmem:[#allocation11] sm:$0x1] %v570_v56 }
 0x284   :  { %899 = shalt.err (!%p896_p8)
}
 0x285   :  { %s900_s15 = scalar_lea.hbm %s1095_s7, 16 }
 0x286   :  { %p901_p9 = scmp.ne.s32.totalorder %s1095_s7, %s900_s15  ;;  %p904_p10 = scmp.lt.u32.totalorder %s900_s15, %s1095_s7 }
 0x288   :  { %p906_p11 = pnand %p904_p10, %p901_p9 }
 0x28a   :  { %909 = shalt.err (!%p906_p11)
}
 0x28b   :  { %581 = dma.vmem_to_hbm [thread:$0]  %s579_s10, 16, %s1095_s7, [#allocation5]  }
 0x28c   :  { %916 = dma.done.wait [#allocation5], 16  }
 0x28d   :  { %917 = vsyncadd [#allocation5], 4294967280 }
 0x28e   :  { %585 = vsyncpa [#allocation4], 1 }
 0x28f   :  { %586 = vsyncpa [#allocation7], 1 }
 0x290   :  { %587 = vsyncpa [#allocation10], 1 }
 0x291   :  { %588 = vsyncpa [#allocation5], 1 }

</bundles_post_ra>
